<compile_context>
chip_gen: v6e
topology: v6e:2x2x1
jax: 0.10.0
libtpu: 0.0.40
codegen_flags: <defaults>
</compile_context>

<pallas_src>
import jax
import jax.numpy as jnp
from jax.experimental import pallas as pl
from jax.experimental.pallas import tpu as pltpu


def _encoder_kernel(x_ref, eps_ref, w1_ref, b1_ref, w2_ref, b2_ref,
                    wp_ref, bp_ref, z_ref):
    """One batch tile of the Encoder forward, fully fused in VMEM."""
    x = x_ref[...]  # bf16 [Bt, D]

    # Linear 1 + LeakyReLU(0.2): MXU matmul, f32 accumulate, f32 epilogue.
    h = jnp.dot(x, w1_ref[...], preferred_element_type=jnp.float32) + b1_ref[...]
    h = jnp.where(h > 0, h, 0.2 * h)

    # Linear 2 with eval-mode BatchNorm1d pre-folded into weights/shift, + LeakyReLU.
    h = jnp.dot(h.astype(w2_ref.dtype), w2_ref[...],
                preferred_element_type=jnp.float32) + b2_ref[...]
    h = jnp.where(h > 0, h, 0.2 * h)

    # Fused (mu || logvar) projection: single [h_dim, 2*z_dim] matmul.
    proj = jnp.dot(h.astype(wp_ref.dtype), wp_ref[...],
                   preferred_element_type=jnp.float32) + bp_ref[...]
    zd = proj.shape[-1] // 2
    mu = proj[:, :zd]
    logvar = proj[:, zd:]

    # Reparameterization: z = eps * exp(logvar / 2) + mu   (exp on the EUP).
    std = jnp.exp(0.5 * logvar)
    z_ref[...] = (eps_ref[...] * std + mu).astype(z_ref.dtype)


def encoder_forward(data, eps, kparams, *, max_tile=4096, interpret=False):
    """data: [B, data_dim] f32, eps: [B, z_dim] f32 reparameterization noise.

    kparams: dict from prepare_kernel_params (BN folded, heads fused, bf16 weights).
    """
    data = jnp.asarray(data, jnp.float32)
    eps = jnp.asarray(eps, jnp.float32)
    B, D = data.shape
    h_dim = kparams["w1"].shape[1]
    z_dim = kparams["wp"].shape[1] // 2

    # Batch tile: multiple of 8 sublanes, capped so tiles fit VMEM on v7x (64 MiB).
    Bt = min(B, max_tile)
    Bt = max(8, ((Bt + 7) // 8) * 8)
    B_pad = ((B + Bt - 1) // Bt) * Bt
    if B_pad != B:
        data = jnp.pad(data, ((0, B_pad - B), (0, 0)))
        eps = jnp.pad(eps, ((0, B_pad - B), (0, 0)))

    # bf16 for the dominant HBM stream (data) and MXU weight inputs.
    x_bf16 = data.astype(jnp.bfloat16)

    grid = (B_pad // Bt,)

    def resident(shape):
        # Weights/biases: constant index_map -> stay VMEM-resident across steps.
        return pl.BlockSpec(shape, lambda i: (0, 0))

    flops = 2 * B_pad * (D * h_dim + h_dim * h_dim + h_dim * 2 * z_dim)
    bytes_accessed = int(
        x_bf16.size * 2 + eps.size * 4 + B_pad * z_dim * 4
        + sum(int(p.size) * p.dtype.itemsize for p in kparams.values())
    )

    out = pl.pallas_call(
        _encoder_kernel,
        out_shape=jax.ShapeDtypeStruct((B_pad, z_dim), jnp.float32),
        grid=grid,
        in_specs=[
            pl.BlockSpec((Bt, D), lambda i: (i, 0)),        # data tile
            pl.BlockSpec((Bt, z_dim), lambda i: (i, 0)),    # eps tile
            resident(kparams["w1"].shape),
            resident(kparams["b1"].shape),
            resident(kparams["w2"].shape),
            resident(kparams["b2"].shape),
            resident(kparams["wp"].shape),
            resident(kparams["bp"].shape),
        ],
        out_specs=pl.BlockSpec((Bt, z_dim), lambda i: (i, 0)),
        compiler_params=pltpu.CompilerParams(
            dimension_semantics=("parallel",),
            vmem_limit_bytes=48 * 1024 * 1024,
        ),
        cost_estimate=pl.CostEstimate(
            flops=flops,
            transcendentals=B_pad * z_dim,
            bytes_accessed=bytes_accessed,
        ),
        interpret=interpret,
    )(x_bf16, eps, kparams["w1"], kparams["b1"], kparams["w2"], kparams["b2"],
      kparams["wp"], kparams["bp"])

    return out[:B]


# ----------------------------- parameter setup ------------------------------

def init_torch_params(key, data_dim, h_dim, z_dim):
    """Deterministic synthetic init mimicking PyTorch defaults. Weights [in, out]."""
    ks = jax.random.split(key, 8)

    def lin(kw, kb, fan_in, fan_out):
        bound = 1.0 / (fan_in ** 0.5)
        w = jax.random.uniform(kw, (fan_in, fan_out), jnp.float32, -bound, bound)
        b = jax.random.uniform(kb, (fan_out,), jnp.float32, -bound, bound)
        return w, b

    w1, b1 = lin(ks[0], ks[1], data_dim, h_dim)
    w2, b2 = lin(ks[2], ks[3], h_dim, h_dim)
    wmu, bmu = lin(ks[4], ks[5], h_dim, z_dim)
    wlv, blv = lin(ks[6], ks[7], h_dim, z_dim)

    # Eval-mode BatchNorm1d parameters (non-trivial values so the fold is tested).
    kg, kb2, km, kv = jax.random.split(jax.random.fold_in(key, 123), 4)
    gamma = 1.0 + 0.1 * jax.random.normal(kg, (h_dim,), jnp.float32)
    beta = 0.1 * jax.random.normal(kb2, (h_dim,), jnp.float32)
    running_mean = 0.1 * jax.random.normal(km, (h_dim,), jnp.float32)
    running_var = jnp.abs(1.0 + 0.1 * jax.random.normal(kv, (h_dim,), jnp.float32))

    return dict(w1=w1, b1=b1, w2=w2, b2=b2, wmu=wmu, bmu=bmu, wlv=wlv, blv=blv,
                gamma=gamma, beta=beta, running_mean=running_mean,
                running_var=running_var, bn_eps=1e-5)


def prepare_kernel_params(p):
    """Fold eval-mode BN into Linear2, fuse mu/logvar heads, cast MXU weights to bf16."""
    scale = p["gamma"] / jnp.sqrt(p["running_var"] + p["bn_eps"])        # [h]
    w2_f = p["w2"] * scale[None, :]                                      # BN scale into W2
    b2_f = (p["b2"] - p["running_mean"]) * scale + p["beta"]             # BN shift into b2
    wp = jnp.concatenate([p["wmu"], p["wlv"]], axis=1)                   # [h, 2*z]
    bp = jnp.concatenate([p["bmu"], p["blv"]], axis=0)                   # [2*z]
    return dict(
        w1=p["w1"].astype(jnp.bfloat16),
        b1=p["b1"].reshape(1, -1).astype(jnp.float32),
        w2=w2_f.astype(jnp.bfloat16),
        b2=b2_f.reshape(1, -1).astype(jnp.float32),
        wp=wp.astype(jnp.bfloat16),
        bp=bp.reshape(1, -1).astype(jnp.float32),
    )


# ------------------------------- references ---------------------------------

def reference_forward_f32(data, eps, p):
    """Original PyTorch semantics (eval-mode BN), pure f32."""
    h = data @ p["w1"] + p["b1"]
    h = jnp.where(h > 0, h, 0.2 * h)
    h = h @ p["w2"] + p["b2"]
    h = (h - p["running_mean"]) / jnp.sqrt(p["running_var"] + p["bn_eps"]) \
        * p["gamma"] + p["beta"]
    h = jnp.where(h > 0, h, 0.2 * h)
    mu = h @ p["wmu"] + p["bmu"]
    logvar = h @ p["wlv"] + p["blv"]
    return eps * jnp.exp(0.5 * logvar) + mu


def reference_forward_matched(data, eps, kp):
    """Same math as the kernel (incl. bf16 casts / folded params), plain XLA ops."""
    x = data.astype(jnp.bfloat16)
    h = jnp.dot(x, kp["w1"], preferred_element_type=jnp.float32) + kp["b1"]
    h = jnp.where(h > 0, h, 0.2 * h)
    h = jnp.dot(h.astype(jnp.bfloat16), kp["w2"],
                preferred_element_type=jnp.float32) + kp["b2"]
    h = jnp.where(h > 0, h, 0.2 * h)
    proj = jnp.dot(h.astype(jnp.bfloat16), kp["wp"],
                   preferred_element_type=jnp.float32) + kp["bp"]
    zd = proj.shape[-1] // 2
    mu, logvar = proj[:, :zd], proj[:, zd:]
    return eps * jnp.exp(0.5 * logvar) + mu


if __name__ == "__main__":
    key = jax.random.PRNGKey(0)
    B, data_dim, h_dim, z_dim = 8, 32, 32, 16

    kd, ke, kp = jax.random.split(key, 3)
    data = jax.random.normal(kd, (B, data_dim), jnp.float32)
    # Reparameterization noise (np.random.normal in the torch code) -> explicit input.
    eps = jax.random.normal(ke, (B, z_dim), jnp.float32)

    torch_params = init_torch_params(kp, data_dim, h_dim, z_dim)
    kernel_params = prepare_kernel_params(torch_params)

    z = encoder_forward(data, eps, kernel_params)
    z = jax.block_until_ready(z)
    assert z.shape == (B, z_dim), z.shape

    ref_exact = reference_forward_matched(data, eps, kernel_params)
    assert jnp.allclose(z, ref_exact, atol=1e-3, rtol=1e-3), "mismatch vs matched ref"

    ref_f32 = reference_forward_f32(data, eps, torch_params)
    assert jnp.allclose(z, ref_f32, atol=5e-2, rtol=5e-2), "mismatch vs f32 reference"

    print("KERNEL_OK")
</pallas_src>

<mosaic_0001>
module attributes {stable_mosaic.version = 11 : i64} {
  func.func @_encoder_kernel(%arg0: i32, %arg1: memref<8x32xbf16, #tpu.memory_space<vmem>>, %arg2: memref<8x16xf32, #tpu.memory_space<vmem>>, %arg3: memref<32x32xbf16, #tpu.memory_space<vmem>>, %arg4: memref<1x32xf32, #tpu.memory_space<vmem>>, %arg5: memref<32x32xbf16, #tpu.memory_space<vmem>>, %arg6: memref<1x32xf32, #tpu.memory_space<vmem>>, %arg7: memref<32x32xbf16, #tpu.memory_space<vmem>>, %arg8: memref<1x32xf32, #tpu.memory_space<vmem>>, %arg9: memref<8x16xf32, #tpu.memory_space<vmem>>) attributes {dimension_semantics = [#tpu.dimension_semantics<parallel>], iteration_bounds = array<i64: 1>, scalar_prefetch = 0 : i64, scratch_operands = 0 : i64, tpu.core_type = #tpu.core_type<tc>, window_params = [{transform_indices = @transform_0, window_bounds = array<i64: 8, 32>}, {transform_indices = @transform_1, window_bounds = array<i64: 8, 16>}, {pipeline_mode = #tpu.pipeline_mode<synchronous>, transform_indices = @transform_2, window_bounds = array<i64: 32, 32>}, {pipeline_mode = #tpu.pipeline_mode<synchronous>, transform_indices = @transform_3, window_bounds = array<i64: 1, 32>}, {pipeline_mode = #tpu.pipeline_mode<synchronous>, transform_indices = @transform_4, window_bounds = array<i64: 32, 32>}, {pipeline_mode = #tpu.pipeline_mode<synchronous>, transform_indices = @transform_5, window_bounds = array<i64: 1, 32>}, {pipeline_mode = #tpu.pipeline_mode<synchronous>, transform_indices = @transform_6, window_bounds = array<i64: 32, 32>}, {pipeline_mode = #tpu.pipeline_mode<synchronous>, transform_indices = @transform_7, window_bounds = array<i64: 1, 32>}, {transform_indices = @transform_8, window_bounds = array<i64: 8, 16>}]} {
    %c0 = arith.constant 0 : index
    %c0_0 = arith.constant 0 : index
    %0 = vector.load %arg1[%c0, %c0_0] : memref<8x32xbf16, #tpu.memory_space<vmem>>, vector<8x32xbf16>
    %c0_1 = arith.constant 0 : index
    %c0_2 = arith.constant 0 : index
    %1 = vector.load %arg3[%c0_1, %c0_2] : memref<32x32xbf16, #tpu.memory_space<vmem>>, vector<32x32xbf16>
    %cst = arith.constant dense<0.000000e+00> : vector<8x32xf32>
    %2 = tpu.matmul %0, %1, %cst {dimension_numbers = #tpu.dot_dimension_numbers<[1], [0], [0], [1], [0, 0, 1, 1], [], []>} : vector<8x32xbf16>, vector<32x32xbf16>, vector<8x32xf32> -> vector<8x32xf32>
    %c0_3 = arith.constant 0 : index
    %c0_4 = arith.constant 0 : index
    %3 = vector.load %arg4[%c0_3, %c0_4] : memref<1x32xf32, #tpu.memory_space<vmem>>, vector<1x32xf32>
    %4 = vector.broadcast %3 : vector<1x32xf32> to vector<8x32xf32>
    %5 = arith.addf %2, %4 : vector<8x32xf32>
    %cst_5 = arith.constant 0.000000e+00 : f32
    %6 = vector.broadcast %cst_5 : f32 to vector<8x32xf32>
    %7 = arith.cmpf ogt, %5, %6 : vector<8x32xf32>
    %cst_6 = arith.constant 2.000000e-01 : f32
    %8 = vector.broadcast %cst_6 : f32 to vector<8x32xf32>
    %9 = arith.mulf %8, %5 : vector<8x32xf32>
    %10 = arith.select %7, %5, %9 : vector<8x32xi1>, vector<8x32xf32>
    %11 = arith.truncf %10 : vector<8x32xf32> to vector<8x32xbf16>
    %c0_7 = arith.constant 0 : index
    %c0_8 = arith.constant 0 : index
    %12 = vector.load %arg5[%c0_7, %c0_8] : memref<32x32xbf16, #tpu.memory_space<vmem>>, vector<32x32xbf16>
    %cst_9 = arith.constant dense<0.000000e+00> : vector<8x32xf32>
    %13 = tpu.matmul %11, %12, %cst_9 {dimension_numbers = #tpu.dot_dimension_numbers<[1], [0], [0], [1], [0, 0, 1, 1], [], []>} : vector<8x32xbf16>, vector<32x32xbf16>, vector<8x32xf32> -> vector<8x32xf32>
    %c0_10 = arith.constant 0 : index
    %c0_11 = arith.constant 0 : index
    %14 = vector.load %arg6[%c0_10, %c0_11] : memref<1x32xf32, #tpu.memory_space<vmem>>, vector<1x32xf32>
    %15 = vector.broadcast %14 : vector<1x32xf32> to vector<8x32xf32>
    %16 = arith.addf %13, %15 : vector<8x32xf32>
    %cst_12 = arith.constant 0.000000e+00 : f32
    %17 = vector.broadcast %cst_12 : f32 to vector<8x32xf32>
    %18 = arith.cmpf ogt, %16, %17 : vector<8x32xf32>
    %cst_13 = arith.constant 2.000000e-01 : f32
    %19 = vector.broadcast %cst_13 : f32 to vector<8x32xf32>
    %20 = arith.mulf %19, %16 : vector<8x32xf32>
    %21 = arith.select %18, %16, %20 : vector<8x32xi1>, vector<8x32xf32>
    %22 = arith.truncf %21 : vector<8x32xf32> to vector<8x32xbf16>
    %c0_14 = arith.constant 0 : index
    %c0_15 = arith.constant 0 : index
    %23 = vector.load %arg7[%c0_14, %c0_15] : memref<32x32xbf16, #tpu.memory_space<vmem>>, vector<32x32xbf16>
    %cst_16 = arith.constant dense<0.000000e+00> : vector<8x32xf32>
    %24 = tpu.matmul %22, %23, %cst_16 {dimension_numbers = #tpu.dot_dimension_numbers<[1], [0], [0], [1], [0, 0, 1, 1], [], []>} : vector<8x32xbf16>, vector<32x32xbf16>, vector<8x32xf32> -> vector<8x32xf32>
    %c0_17 = arith.constant 0 : index
    %c0_18 = arith.constant 0 : index
    %25 = vector.load %arg8[%c0_17, %c0_18] : memref<1x32xf32, #tpu.memory_space<vmem>>, vector<1x32xf32>
    %26 = vector.broadcast %25 : vector<1x32xf32> to vector<8x32xf32>
    %27 = arith.addf %24, %26 : vector<8x32xf32>
    %28 = vector.extract_strided_slice %27 {offsets = [0, 0], sizes = [8, 16], strides = [1, 1]} : vector<8x32xf32> to vector<8x16xf32>
    %29 = vector.extract_strided_slice %27 {offsets = [0, 16], sizes = [8, 16], strides = [1, 1]} : vector<8x32xf32> to vector<8x16xf32>
    %cst_19 = arith.constant 5.000000e-01 : f32
    %30 = vector.broadcast %cst_19 : f32 to vector<8x16xf32>
    %31 = arith.mulf %30, %29 : vector<8x16xf32>
    %32 = math.exp %31 : vector<8x16xf32>
    %c0_20 = arith.constant 0 : index
    %c0_21 = arith.constant 0 : index
    %33 = vector.load %arg2[%c0_20, %c0_21] : memref<8x16xf32, #tpu.memory_space<vmem>>, vector<8x16xf32>
    %34 = arith.mulf %33, %32 : vector<8x16xf32>
    %35 = arith.addf %34, %28 : vector<8x16xf32>
    %c0_22 = arith.constant 0 : index
    %c0_23 = arith.constant 0 : index
    %36 = vector.load %arg9[%c0_22, %c0_23] : memref<8x16xf32, #tpu.memory_space<vmem>>, vector<8x16xf32>
    tpu.vector_store %arg9[%c0_22, %c0_23], %35 {strides = array<i32>} : memref<8x16xf32, #tpu.memory_space<vmem>>, vector<8x16xf32>,
    return
  }
  func.func @transform_0(%arg0: i32) -> (i32, i32) {
    %c0_i32 = arith.constant 0 : i32
    %c0_i32_0 = arith.constant 0 : i32
    return %arg0, %c0_i32 : i32, i32
  }
  func.func @transform_1(%arg0: i32) -> (i32, i32) {
    %c0_i32 = arith.constant 0 : i32
    %c0_i32_0 = arith.constant 0 : i32
    return %arg0, %c0_i32 : i32, i32
  }
  func.func @transform_2(%arg0: i32) -> (i32, i32) {
    %c0_i32 = arith.constant 0 : i32
    %c0_i32_0 = arith.constant 0 : i32
    %c0_i32_1 = arith.constant 0 : i32
    return %c0_i32, %c0_i32_0 : i32, i32
  }
  func.func @transform_3(%arg0: i32) -> (i32, i32) {
    %c0_i32 = arith.constant 0 : i32
    %c0_i32_0 = arith.constant 0 : i32
    %c0_i32_1 = arith.constant 0 : i32
    return %c0_i32, %c0_i32_0 : i32, i32
  }
  func.func @transform_4(%arg0: i32) -> (i32, i32) {
    %c0_i32 = arith.constant 0 : i32
    %c0_i32_0 = arith.constant 0 : i32
    %c0_i32_1 = arith.constant 0 : i32
    return %c0_i32, %c0_i32_0 : i32, i32
  }
  func.func @transform_5(%arg0: i32) -> (i32, i32) {
    %c0_i32 = arith.constant 0 : i32
    %c0_i32_0 = arith.constant 0 : i32
    %c0_i32_1 = arith.constant 0 : i32
    return %c0_i32, %c0_i32_0 : i32, i32
  }
  func.func @transform_6(%arg0: i32) -> (i32, i32) {
    %c0_i32 = arith.constant 0 : i32
    %c0_i32_0 = arith.constant 0 : i32
    %c0_i32_1 = arith.constant 0 : i32
    return %c0_i32, %c0_i32_0 : i32, i32
  }
  func.func @transform_7(%arg0: i32) -> (i32, i32) {
    %c0_i32 = arith.constant 0 : i32
    %c0_i32_0 = arith.constant 0 : i32
    %c0_i32_1 = arith.constant 0 : i32
    return %c0_i32, %c0_i32_0 : i32, i32
  }
  func.func @transform_8(%arg0: i32) -> (i32, i32) {
    %c0_i32 = arith.constant 0 : i32
    %c0_i32_0 = arith.constant 0 : i32
    return %arg0, %c0_i32 : i32, i32
  }
}

</mosaic_0001>

<bundles_post_ra>
// kernel: tpu_custom_call.1
= control target key start
LH: loop header
LB: loop body
LE: loop exit
PB: predicated region body
PF: predicated region fallthrough
CT: control target
= control target key end

     0   :  { %13 = vsyncpa [#allocation3], 0  ;;  %s619_s0 = inlined_call_operand.hbm [shape: bf16[8,32], index: 0, kind: input, shape index: {}]   ;;  %s620_s1 = inlined_call_operand.hbm [shape: f32[8,16], index: 1, kind: input, shape index: {}]   ;;  %s621_s2 = inlined_call_operand.hbm [shape: bf16[32,32], index: 2, kind: input, shape index: {}]   ;;  %s622_s3 = inlined_call_operand.vmem [shape: f32[1,32], index: 3, kind: input, shape index: {}]   ;;  %s623_s4 = inlined_call_operand.hbm [shape: bf16[32,32], index: 4, kind: input, shape index: {}]   ;;  %s624_s5 = inlined_call_operand.vmem [shape: f32[1,32], index: 5, kind: input, shape index: {}]   ;;  %s625_s6 = inlined_call_operand.hbm [shape: bf16[32,32], index: 6, kind: input, shape index: {}]   ;;  %s626_s7 = inlined_call_operand.vmem [shape: f32[1,32], index: 7, kind: input, shape index: {}]   ;;  %s627_s8 = inlined_call_operand.hbm [shape: f32[8,16], index: 8, kind: output, shape index: {}]  }
   0x1   :  { %14 = vsyncpa [#allocation6], 0 }
   0x2   :  { %15 = vsyncpa [#allocation9], 0 }
   0x3   :  { %16 = vsyncpa [#allocation4], 0  ;;  %s524_s27 = smov [#allocation5]  }
   0x4   :  { %s33_s28 = sshll.u32 %s524_s27, 4  ;;  %s34_s28 = int_to_ptr.vmem [resolvable:$true] %s33_s28 }
   0x5   :  { %s404_s29 = scalar_lea.vmem %s34_s28, 128  ;;  %p409_p1 = scmp.lt.s32.totalorder %s34_s28, %s34_s28 }
   0x6   :  { %p405_p0 = scmp.ne.s32.totalorder %s34_s28, %s404_s29  ;;  %p410_p2 = scmp.lt.s32.totalorder %s404_s29, %s404_s29 }
   0x8   :  { %p411_p3 = por %p410_p2, %p409_p1 }
   0xa   :  { %p412_p4 = pnand %p411_p3, %p405_p0 }
   0xc   :  { %415 = shalt.err (!%p412_p4)
}
   0xd   :  { %36 = dma.hbm_to_vmem [thread:$0]  %s620_s1, 128, %s34_s28, [#allocation6]  }
   0xe   :  { %s525_s10 = smov [#allocation8]   ;;  %s526_s12 = smov [#allocation2]  }
   0xf   :  { %s56_s11 = sshll.u32 %s525_s10, 4  ;;  %s23_s13 = sshll.u32 %s526_s12, 4  ;;  %s57_s11 = int_to_ptr.vmem [resolvable:$true] %s56_s11  ;;  %s24_s13 = int_to_ptr.vmem [resolvable:$true] %s23_s13 }
  0x10   :  { %s424_s14 = scalar_lea.vmem %s57_s11, 256  ;;  %p429_p6 = scmp.lt.s32.totalorder %s57_s11, %s57_s11 }
  0x11   :  { %p425_p5 = scmp.ne.s32.totalorder %s57_s11, %s424_s14  ;;  %p430_p7 = scmp.lt.s32.totalorder %s424_s14, %s424_s14 }
  0x13   :  { %p431_p8 = por %p430_p7, %p429_p6 }
  0x15   :  { %p432_p9 = pnand %p431_p8, %p425_p5 }
  0x17   :  { %435 = shalt.err (!%p432_p9)
}
  0x18   :  { %s527_s15 = smov 64   ;;  %s528_s16 = smov 4  }
  0x19   :  { %62 = dma.hbm_to_vmem [thread:$0]  %s623_s4, 256, %s57_s11, [#allocation9], %s527_s15, %s527_s15, %s528_s16  }
  0x1a   :  { %s444_s1 = scalar_lea.vmem %s24_s13, 64  ;;  %p449_p11 = scmp.lt.s32.totalorder %s24_s13, %s24_s13 }
  0x1b   :  { %p445_p10 = scmp.ne.s32.totalorder %s24_s13, %s444_s1  ;;  %p450_p12 = scmp.lt.s32.totalorder %s444_s1, %s444_s1 }
  0x1d   :  { %p451_p13 = por %p450_p12, %p449_p11 }
  0x1f   :  { %p452_p0 = pnand %p451_p13, %p445_p10 }
  0x21   :  { %455 = shalt.err (!%p452_p0)
}
  0x22   :  { %26 = dma.hbm_to_vmem [thread:$0]  %s619_s0, 64, %s24_s13, [#allocation3]  }
  0x23   :  { %s529_s21 = smov [#allocation7]   ;;  %s530_s23 = smov [#allocation10]  }
  0x24   :  { %s42_s22 = sshll.u32 %s529_s21, 4  ;;  %s70_s24 = sshll.u32 %s530_s23, 4  ;;  %s43_s22 = int_to_ptr.vmem [resolvable:$true] %s42_s22  ;;  %s71_s24 = int_to_ptr.vmem [resolvable:$true] %s70_s24 }
  0x25   :  { %s464_s25 = scalar_lea.vmem %s43_s22, 256  ;;  %p469_p2 = scmp.lt.s32.totalorder %s43_s22, %s43_s22 }
  0x26   :  { %p465_p1 = scmp.ne.s32.totalorder %s43_s22, %s464_s25  ;;  %p470_p3 = scmp.lt.s32.totalorder %s464_s25, %s464_s25 }
  0x28   :  { %p471_p4 = por %p470_p3, %p469_p2 }
  0x2a   :  { %p472_p5 = pnand %p471_p4, %p465_p1 }
  0x2c   :  { %475 = shalt.err (!%p472_p5)
}
  0x2d   :  { %48 = dma.hbm_to_vmem [thread:$0]  %s621_s2, 256, %s43_s22, [#allocation6], %s527_s15, %s527_s15, %s528_s16  }
  0x2e   :  { %s484_s0 = scalar_lea.vmem %s71_s24, 256  ;;  %p489_p7 = scmp.lt.s32.totalorder %s71_s24, %s71_s24 }
  0x2f   :  { %p485_p6 = scmp.ne.s32.totalorder %s71_s24, %s484_s0  ;;  %p490_p8 = scmp.lt.s32.totalorder %s484_s0, %s484_s0 }
  0x31   :  { %p491_p9 = por %p490_p8, %p489_p7 }
  0x33   :  { %p492_p10 = pnand %p491_p9, %p485_p6 }
  0x35   :  { %495 = shalt.err (!%p492_p10)
}
  0x36   :  { %76 = dma.hbm_to_vmem [thread:$0]  %s625_s6, 256, %s71_s24, [#allocation9], %s527_s15, %s527_s15, %s528_s16  }
  0x37   :  { %516 = dma.done.wait [#allocation3], 64  }
  0x38   :  { %517 = vsyncadd [#allocation3], 4294967232 }
  0x39   :  { %518 = dma.done.wait [#allocation6], 384  }
  0x3a   :  { %519 = vsyncadd [#allocation6], 4294966912 }
  0x3b   :  { %520 = dma.done.wait [#allocation9], 512  }
  0x3c   :  { %521 = vsyncadd [#allocation9], 4294966784  ;;  %v531_v0 = vmov 0.0   ;;  %vm532_vm0 = vmmov 0   ;;  %v388_v1 = vld [vmem:[#allocation7 + $0x8] sm:$0xff]   ;;  %v389_v2 = vld [vmem:[#allocation7] sm:$0xff]  }
  0x3d   :  { %353 = vmatprep.subr.bf16.mxu0 %v531_v0  ;;  %357 = vmatprep.mubr.msk.bf16.mxu0 %vm532_vm0, %v531_v0  ;;  %v95_v3 = vld [vmem:[#allocation2] sm:$0xf]  ;;  %vm119_vm1 = vcmask 261120   ;;  %v390_v4 = vld [vmem:[#allocation8 + $0x8] sm:$0xff]   ;;  %v392_v15 = vld [vmem:[#allocation10 + $0x8] sm:$0xff]   ;;  %s534_s10 = smov [#allocation11]  }
  0x3e   :  { %361 = vmatprep.subr.bf16.mxu1 %v531_v0  ;;  %365 = vmatprep.mubr.msk.bf16.mxu1 %vm532_vm0, %v531_v0  ;;  %v391_v5 = vld [vmem:[#allocation8] sm:$0xff]   ;;  %v393_v16 = vld [vmem:[#allocation10] sm:$0xff]   ;;  %v306_v35 = vld [vmem:[#allocation5] sm:$0xff]  ;;  %s321_s11 = sshll.u32 %s534_s10, 4  ;;  %vm313_vm4 = vcmask 130048   ;;  %s322_s11 = int_to_ptr.vmem [resolvable:$true] %s321_s11 }
  0x3f   :  { %354 = vmatpush3.bf16.msra.mxu0 %v388_v1  ;;  %362 = vmatpush3.bf16.msra.mxu1 %v390_v4  ;;  %v332_v6 = vld [vmem:[%s622_s3] ss:$0 sm:$0xff]  ;;  %p501_p12 = scmp.lt.s32.totalorder %s322_s11, %s322_s11 }
  0x40   :  { %355 = vmatprep.subr.bf16.mxu0 %v531_v0  ;;  %363 = vmatprep.subr.bf16.mxu1 %v531_v0  ;;  %v336_v17 = vld [vmem:[%s624_s5] ss:$0 sm:$0xff]  ;;  %s533_s5 = smov 112  }
  0x41   :  { %v340_v26 = vld [vmem:[%s626_s7] ss:$0 sm:$0xff]  ;;  %s496_s7 = scalar_lea.vmem %s322_s11, 128 }
  0x42   :  { %p497_p11 = scmp.ne.s32.totalorder %s322_s11, %s496_s7  ;;  %p502_p13 = scmp.lt.s32.totalorder %s496_s7, %s496_s7 }
  0x43   :  { %356 = vmatpush3.bf16.msra.mxu0 %v389_v2  ;;  %364 = vmatpush3.bf16.msra.mxu1 %v391_v5 }
  0x44   :  { %369 = vmatprep.subr.bf16.mxu0 %v531_v0  ;;  %p503_p0 = por %p502_p13, %p501_p12 }
  0x46   :  { %358 = vmatmul.mubr.msk.bf16.vlgmr.msra.gmra.mxu0 %vm119_vm1, %v95_v3  ;;  %p504_p1 = pnand %p503_p0, %p497_p11 }
  0x47   :  { %373 = vmatprep.mubr.msk.bf16.mxu0 %vm532_vm0, %v531_v0  ;;  %370 = vmatpush3.bf16.msra.mxu0 %v392_v15 }
  0x48   :  { %371 = vmatprep.subr.bf16.mxu0 %v531_v0 }
  0x4b   :  { %372 = vmatpush3.bf16.msra.mxu0 %v393_v16 }
 0x106   :  { %v157_v7 = vpop.f32.mrf.mxu0 }
 0x107   :  { %v158_v8 = vadd.f32 %v332_v6, %v157_v7 }
 0x108   :  { %v359_v9 = vpop.f32.mrf.mxu0 }
 0x109   :  { %vm163_vm2 = vcmp.gt.f32.partialorder %v158_v8, 0.0  ;;  %v164_v10 = vmul.f32 0.2, %v158_v8 }
 0x10a   :  { %v160_v11 = vpop.f32.mrf.mxu0 }
 0x10b   :  { %v165_v12 = vsel %vm163_vm2, %v158_v8, %v164_v10 }
 0x10c   :  { %v166_v13 = vpack.c.bf16 %v165_v12, %v165_v12  ;;  %v360_v14 = vpop.f32.mrf.mxu0 }
 0x10e   :  { %366 = vmatmul.mubr.msk.bf16.vlgmr.msra.gmra.mxu1 %vm119_vm1, %v166_v13 }
 0x1ce   :  { %v227_v18 = vpop.f32.mrf.mxu1 }
 0x1cf   :  { %v228_v19 = vadd.f32 %v336_v17, %v227_v18 }
 0x1d0   :  { %v367_v20 = vpop.f32.mrf.mxu1 }
 0x1d1   :  { %vm233_vm3 = vcmp.gt.f32.partialorder %v228_v19, 0.0  ;;  %v234_v21 = vmul.f32 0.2, %v228_v19 }
 0x1d2   :  { %v230_v22 = vpop.f32.mrf.mxu1 }
 0x1d3   :  { %v235_v23 = vsel %vm233_vm3, %v228_v19, %v234_v21 }
 0x1d4   :  { %v236_v24 = vpack.c.bf16 %v235_v23, %v235_v23  ;;  %v368_v25 = vpop.f32.mrf.mxu1 }
 0x1d6   :  { %374 = vmatmul.mubr.msk.bf16.vlgmr.msra.gmra.mxu0 %vm119_vm1, %v236_v24 }
 0x296   :  { %v297_v27 = vpop.f32.mrf.mxu0 }
 0x297   :  { %v298_v28 = vadd.f32 %v340_v26, %v297_v27 }
 0x298   :  { %v375_v29 = vpop.f32.mrf.mxu0 }
 0x299   :  { %v303_v30 = vmul.f32 0.5, %v298_v28 }
 0x29a   :  { %v300_v31 = vpop.f32.mrf.mxu0 }
 0x29b   :  { %v304_v32 = vmul.f32 1.442695, %v303_v30 }
 0x29c   :  { %v376_v33 = vpop.f32.mrf.mxu0 }
 0x29d   :  { %394 = vpow2.f32 %v304_v32 }
 0x2aa   :  { %v395_v34 = vpop.eup %394 }
 0x2ab   :  { %308 = vrot.lane.b32.xlu0 %v395_v34, %s533_s5 }
 0x31d   :  { %v309_v36 = vpop.permute.xlu0 %308 }
 0x31e   :  { %v311_v37 = vmul.f32 %v309_v36, %v306_v35 }
 0x320   :  { %v312_v38 = vadd.f32 %v311_v37, %v298_v28 }
 0x322   :  { %314 = vst.msk [vmem:[#allocation11] sm:$0xff] %vm313_vm4, %v312_v38 }
 0x323   :  { %507 = shalt.err (!%p504_p1)
}
 0x324   :  { %324 = dma.vmem_to_hbm [thread:$0]  %s322_s11, 128, %s627_s8, [#allocation4]  }
 0x325   :  { %522 = dma.done.wait [#allocation4], 128  }
 0x326   :  { %523 = vsyncadd [#allocation4], 4294967168 }
 0x327   :  { %328 = vsyncpa [#allocation3], 1 }
 0x328   :  { %329 = vsyncpa [#allocation6], 1 }
 0x329   :  { %330 = vsyncpa [#allocation9], 1 }
 0x32a   :  { %331 = vsyncpa [#allocation4], 1 }

</bundles_post_ra>
